<compile_context>
chip_gen: v5e
topology: v5e:2x2
jax: 0.10.0
libtpu: 0.0.40
codegen_flags: <defaults>
</compile_context>

<pallas_src>
import jax
import jax.numpy as jnp
from jax.experimental import pallas as pl
from jax.experimental.pallas import tpu as pltpu


KS = 3            # 3x3 kernel, stride 1, pad 1 (module defaults)
BN_EPS = 1e-5


def _banded_weights(w_hwio, width):
    """Fold the kw taps + W-direction zero padding into a banded matmul weight.

    w_hwio: [KS, KS, Cin, Cout]  ->  [KS, width*Cin, width*Cout]
    Wband[kh][(c+kw-1)*Cin+ci, c*Cout+co] = w[kh, kw, ci, co]  (edge-clipped).
    """
    ks, _, cin, cout = w_hwio.shape
    pad = (ks - 1) // 2
    p = jnp.arange(width)[None, :, None]          # source column
    c = jnp.arange(width)[None, None, :]          # output column
    k = jnp.arange(ks)[:, None, None]             # kw tap
    sel = (p == c + k - pad).astype(w_hwio.dtype)            # [KS, W, W]
    wb = jnp.einsum('kpc,hkio->hpico', sel, w_hwio)          # [KS, W, Cin, W, Cout]
    return wb.reshape(ks, width * cin, width * cout)


def _fused_conv_bn_relu_kernel(x_ref, wb1_ref, wb2_ref, s1_ref, b1_ref,
                               s2_ref, b2_ref, out_ref, h1_ref):
    """Two fused conv3x3(s=1,p=1) + folded-BN + ReLU layers for one image.

    x_ref   : [H+2, W*Cin]      row-padded, lane-dense input block
    wb1_ref : [3, W*Cin,  W*Cmid]  banded layer-1 weights (VMEM resident)
    wb2_ref : [3, W*Cmid, W*Cout]  banded layer-2 weights (VMEM resident)
    s*_ref  : [1, W*C*]         per-lane BN-fold scale / bias
    out_ref : [H, W*Cout]       lane-dense output block
    h1_ref  : [H+2, W*Cmid]     VMEM scratch holding layer-1 output + zero halo
    """
    h = out_ref.shape[0]
    wcmid = wb1_ref.shape[2]

    # ---- layer 1: 3 banded MXU matmuls (one per kh), f32 accumulation ----
    acc1 = jnp.zeros((h, wcmid), jnp.float32)
    for kh in range(KS):
        acc1 += jnp.dot(x_ref[pl.ds(kh, h), :], wb1_ref[kh],
                        preferred_element_type=jnp.float32)
    y1 = jnp.maximum(acc1 * s1_ref[...] + b1_ref[...], 0.0)      # BN fold + ReLU

    # Layer-2 row zero-padding lives in the VMEM scratch (no HBM round trip).
    zrow = jnp.zeros((1, wcmid), h1_ref.dtype)
    h1_ref[pl.ds(0, 1), :] = zrow
    h1_ref[pl.ds(h + 1, 1), :] = zrow
    h1_ref[pl.ds(1, h), :] = y1.astype(h1_ref.dtype)

    # ---- layer 2 ----
    wcout = wb2_ref.shape[2]
    acc2 = jnp.zeros((h, wcout), jnp.float32)
    for kh in range(KS):
        acc2 += jnp.dot(h1_ref[pl.ds(kh, h), :], wb2_ref[kh],
                        preferred_element_type=jnp.float32)
    y2 = jnp.maximum(acc2 * s2_ref[...] + b2_ref[...], 0.0)
    out_ref[...] = y2.astype(out_ref.dtype)


def _fused_conv_block(x_nhwc, params, *, compute_dtype=jnp.float32):
    """x_nhwc: [N,H,W,Cin] -> [N,H,W,Cout]; two fused conv3x3+BN+ReLU layers."""
    (w1, s1, b1), (w2, s2, b2) = params
    n, h, w, cin = x_nhwc.shape
    cmid = w1.shape[-1]
    cout = w2.shape[-1]

    # Lane-dense flat layout; only the H direction is zero-padded (2 rows).
    xp = jnp.pad(x_nhwc, ((0, 0), (1, 1), (0, 0), (0, 0)))
    xp = xp.reshape(n, h + 2, w * cin).astype(compute_dtype)

    wb1 = _banded_weights(w1, w).astype(compute_dtype)     # [3, W*Cin,  W*Cmid]
    wb2 = _banded_weights(w2, w).astype(compute_dtype)     # [3, W*Cmid, W*Cout]

    # Per-lane (c*Cout+co) BN-fold scale / bias, kept in f32 for the epilogue.
    s1l = jnp.tile(s1, w).reshape(1, w * cmid).astype(jnp.float32)
    b1l = jnp.tile(b1, w).reshape(1, w * cmid).astype(jnp.float32)
    s2l = jnp.tile(s2, w).reshape(1, w * cout).astype(jnp.float32)
    b2l = jnp.tile(b2, w).reshape(1, w * cout).astype(jnp.float32)

    item = jnp.dtype(compute_dtype).itemsize
    cost = pl.CostEstimate(
        flops=2 * n * h * w * KS * KS * (cin * cmid + cmid * cout),
        transcendentals=0,
        bytes_accessed=(xp.size * item + (wb1.size + wb2.size) * item
                        + n * h * w * cout * 4),
    )

    out = pl.pallas_call(
        _fused_conv_bn_relu_kernel,
        out_shape=jax.ShapeDtypeStruct((n, h, w * cout), jnp.float32),
        grid_spec=pltpu.PrefetchScalarGridSpec(
            num_scalar_prefetch=0,
            grid=(n,),
            in_specs=[
                pl.BlockSpec((None, h + 2, w * cin), lambda b: (b, 0, 0)),
                pl.BlockSpec((KS, w * cin, w * cmid), lambda b: (0, 0, 0)),
                pl.BlockSpec((KS, w * cmid, w * cout), lambda b: (0, 0, 0)),
                pl.BlockSpec((1, w * cmid), lambda b: (0, 0)),
                pl.BlockSpec((1, w * cmid), lambda b: (0, 0)),
                pl.BlockSpec((1, w * cout), lambda b: (0, 0)),
                pl.BlockSpec((1, w * cout), lambda b: (0, 0)),
            ],
            out_specs=pl.BlockSpec((None, h, w * cout), lambda b: (b, 0, 0)),
            scratch_shapes=[pltpu.VMEM((h + 2, w * cmid), compute_dtype)],
        ),
        compiler_params=pltpu.CompilerParams(
            dimension_semantics=("parallel",),   # batch shards across TCs (v7x)
        ),
        cost_estimate=cost,
    )(xp, wb1, wb2, s1l, b1l, s2l, b2l)

    return out.reshape(n, h, w, cout)            # free metadata reshape


def init_conv2d_down_block_params(key, in_size, out_size, n=2, is_batchnorm=True):
    """Deterministic kaiming-style init of the block's parameters (eval-mode BN fold)."""
    params = []
    cin = in_size
    for _ in range(n):
        key, kw_key, kb_key = jax.random.split(key, 3)
        fan_in = cin * KS * KS
        std = (2.0 / fan_in) ** 0.5                       # kaiming normal (relu gain)
        # weight in HWIO layout for the NHWC kernel: [kh, kw, Cin, Cout]
        weight = std * jax.random.normal(kw_key, (KS, KS, cin, out_size), dtype=jnp.float32)
        conv_bias = 0.01 * jax.random.normal(kb_key, (out_size,), dtype=jnp.float32)

        if is_batchnorm:
            gamma = jnp.ones((out_size,), jnp.float32)
            beta = jnp.zeros((out_size,), jnp.float32)
            running_mean = jnp.zeros((out_size,), jnp.float32)
            running_var = jnp.ones((out_size,), jnp.float32)
            s = gamma / jnp.sqrt(running_var + BN_EPS)
            scale = s
            bias = (conv_bias - running_mean) * s + beta
        else:
            scale = jnp.ones((out_size,), jnp.float32)
            bias = conv_bias

        params.append((weight, scale, bias))
        cin = out_size
    return params


def conv2d_down_block_forward(x_nchw, params, *, compute_dtype=jnp.float32):
    """PyTorch-compatible entry point: x in NCHW, returns NCHW (f32)."""
    assert len(params) == 2, "fused kernel implements the n=2 block"
    x = jnp.transpose(x_nchw, (0, 2, 3, 1))               # NCHW -> NHWC
    y = _fused_conv_block(x, params, compute_dtype=compute_dtype)
    return jnp.transpose(y, (0, 3, 1, 2))                 # NHWC -> NCHW


def _reference_forward(x_nchw, params):
    """Pure-JAX reference (lax conv) for correctness check."""
    x = x_nchw.astype(jnp.float32)
    for (weight, scale, bias) in params:
        w_oihw = jnp.transpose(weight, (3, 2, 0, 1))       # HWIO -> OIHW
        y = jax.lax.conv_general_dilated(
            x, w_oihw, window_strides=(1, 1), padding=((1, 1), (1, 1)),
            dimension_numbers=("NCHW", "OIHW", "NCHW"))
        y = y * scale[None, :, None, None] + bias[None, :, None, None]
        x = jnp.maximum(y, 0.0)
    return x


if __name__ == "__main__":
    key = jax.random.PRNGKey(0)
    k_x, k_p = jax.random.split(key)

    N, Cin, H, W = 2, 4, 16, 16
    Cout = 8

    x = jax.random.normal(k_x, (N, Cin, H, W), dtype=jnp.float32)
    params = init_conv2d_down_block_params(k_p, Cin, Cout, n=2, is_batchnorm=True)

    ref = _reference_forward(x, params)

    # 1) f32 path
    out = jax.block_until_ready(conv2d_down_block_forward(x, params))
    assert out.shape == (N, Cout, H, W), out.shape
    assert jnp.allclose(out, ref, atol=1e-3, rtol=1e-3), \
        float(jnp.max(jnp.abs(out - ref)))

    # 2) bf16 operand path (f32 accumulation + f32 epilogue) — looser tolerance
    out_bf16 = jax.block_until_ready(
        conv2d_down_block_forward(x, params, compute_dtype=jnp.bfloat16))
    assert jnp.allclose(out_bf16, ref, atol=5e-2, rtol=5e-2), \
        float(jnp.max(jnp.abs(out_bf16 - ref)))

    print("KERNEL_OK")
</pallas_src>

<mosaic_0001>
module attributes {stable_mosaic.version = 11 : i64} {
  func.func @_fused_conv_bn_relu_kernel(%arg0: i32, %arg1: memref<1x18x64xf32, #tpu.memory_space<vmem>>, %arg2: memref<3x64x128xf32, #tpu.memory_space<vmem>>, %arg3: memref<3x128x128xf32, #tpu.memory_space<vmem>>, %arg4: memref<1x128xf32, #tpu.memory_space<vmem>>, %arg5: memref<1x128xf32, #tpu.memory_space<vmem>>, %arg6: memref<1x128xf32, #tpu.memory_space<vmem>>, %arg7: memref<1x128xf32, #tpu.memory_space<vmem>>, %arg8: memref<1x16x128xf32, #tpu.memory_space<vmem>>, %arg9: memref<18x128xf32, #tpu.memory_space<vmem>>) attributes {dimension_semantics = [#tpu.dimension_semantics<parallel>], iteration_bounds = array<i64: 2>, scalar_prefetch = 0 : i64, scratch_operands = 1 : i64, tpu.core_type = #tpu.core_type<tc>, window_params = [{transform_indices = @transform_0, window_bounds = array<i64: 1, 18, 64>}, {pipeline_mode = #tpu.pipeline_mode<synchronous>, transform_indices = @transform_1, window_bounds = array<i64: 3, 64, 128>}, {pipeline_mode = #tpu.pipeline_mode<synchronous>, transform_indices = @transform_2, window_bounds = array<i64: 3, 128, 128>}, {pipeline_mode = #tpu.pipeline_mode<synchronous>, transform_indices = @transform_3, window_bounds = array<i64: 1, 128>}, {pipeline_mode = #tpu.pipeline_mode<synchronous>, transform_indices = @transform_4, window_bounds = array<i64: 1, 128>}, {pipeline_mode = #tpu.pipeline_mode<synchronous>, transform_indices = @transform_5, window_bounds = array<i64: 1, 128>}, {pipeline_mode = #tpu.pipeline_mode<synchronous>, transform_indices = @transform_6, window_bounds = array<i64: 1, 128>}, {transform_indices = @transform_7, window_bounds = array<i64: 1, 16, 128>}]} {
    %cst = arith.constant 0.000000e+00 : f32
    %0 = vector.broadcast %cst : f32 to vector<16x128xf32>
    %c0 = arith.constant 0 : index
    %c0_0 = arith.constant 0 : index
    %c0_1 = arith.constant 0 : index
    %1 = vector.load %arg1[%c0, %c0_0, %c0_1] : memref<1x18x64xf32, #tpu.memory_space<vmem>>, vector<1x16x64xf32>
    %2 = vector.shape_cast %1 : vector<1x16x64xf32> to vector<16x64xf32>
    %c0_2 = arith.constant 0 : index
    %c0_3 = arith.constant 0 : index
    %c0_4 = arith.constant 0 : index
    %3 = vector.load %arg2[%c0_2, %c0_3, %c0_4] : memref<3x64x128xf32, #tpu.memory_space<vmem>>, vector<1x64x128xf32>
    %4 = vector.shape_cast %3 : vector<1x64x128xf32> to vector<64x128xf32>
    %cst_5 = arith.constant dense<0.000000e+00> : vector<16x128xf32>
    %5 = tpu.matmul %2, %4, %cst_5 {dimension_numbers = #tpu.dot_dimension_numbers<[1], [0], [0], [1], [0, 0, 1, 1], [], []>} : vector<16x64xf32>, vector<64x128xf32>, vector<16x128xf32> -> vector<16x128xf32>
    %6 = arith.addf %0, %5 : vector<16x128xf32>
    %c0_6 = arith.constant 0 : index
    %c1 = arith.constant 1 : index
    %c0_7 = arith.constant 0 : index
    %7 = vector.load %arg1[%c0_6, %c1, %c0_7] : memref<1x18x64xf32, #tpu.memory_space<vmem>>, vector<1x16x64xf32>
    %8 = vector.shape_cast %7 : vector<1x16x64xf32> to vector<16x64xf32>
    %c1_8 = arith.constant 1 : index
    %c0_9 = arith.constant 0 : index
    %c0_10 = arith.constant 0 : index
    %9 = vector.load %arg2[%c1_8, %c0_9, %c0_10] : memref<3x64x128xf32, #tpu.memory_space<vmem>>, vector<1x64x128xf32>
    %10 = vector.shape_cast %9 : vector<1x64x128xf32> to vector<64x128xf32>
    %cst_11 = arith.constant dense<0.000000e+00> : vector<16x128xf32>
    %11 = tpu.matmul %8, %10, %cst_11 {dimension_numbers = #tpu.dot_dimension_numbers<[1], [0], [0], [1], [0, 0, 1, 1], [], []>} : vector<16x64xf32>, vector<64x128xf32>, vector<16x128xf32> -> vector<16x128xf32>
    %12 = arith.addf %6, %11 : vector<16x128xf32>
    %c0_12 = arith.constant 0 : index
    %c2 = arith.constant 2 : index
    %c0_13 = arith.constant 0 : index
    %13 = vector.load %arg1[%c0_12, %c2, %c0_13] : memref<1x18x64xf32, #tpu.memory_space<vmem>>, vector<1x16x64xf32>
    %14 = vector.shape_cast %13 : vector<1x16x64xf32> to vector<16x64xf32>
    %c2_14 = arith.constant 2 : index
    %c0_15 = arith.constant 0 : index
    %c0_16 = arith.constant 0 : index
    %15 = vector.load %arg2[%c2_14, %c0_15, %c0_16] : memref<3x64x128xf32, #tpu.memory_space<vmem>>, vector<1x64x128xf32>
    %16 = vector.shape_cast %15 : vector<1x64x128xf32> to vector<64x128xf32>
    %cst_17 = arith.constant dense<0.000000e+00> : vector<16x128xf32>
    %17 = tpu.matmul %14, %16, %cst_17 {dimension_numbers = #tpu.dot_dimension_numbers<[1], [0], [0], [1], [0, 0, 1, 1], [], []>} : vector<16x64xf32>, vector<64x128xf32>, vector<16x128xf32> -> vector<16x128xf32>
    %18 = arith.addf %12, %17 : vector<16x128xf32>
    %c0_18 = arith.constant 0 : index
    %c0_19 = arith.constant 0 : index
    %19 = vector.load %arg4[%c0_18, %c0_19] : memref<1x128xf32, #tpu.memory_space<vmem>>, vector<1x128xf32>
    %20 = vector.broadcast %19 : vector<1x128xf32> to vector<16x128xf32>
    %21 = arith.mulf %18, %20 : vector<16x128xf32>
    %c0_20 = arith.constant 0 : index
    %c0_21 = arith.constant 0 : index
    %22 = vector.load %arg5[%c0_20, %c0_21] : memref<1x128xf32, #tpu.memory_space<vmem>>, vector<1x128xf32>
    %23 = vector.broadcast %22 : vector<1x128xf32> to vector<16x128xf32>
    %24 = arith.addf %21, %23 : vector<16x128xf32>
    %cst_22 = arith.constant 0.000000e+00 : f32
    %25 = vector.broadcast %cst_22 : f32 to vector<16x128xf32>
    %26 = arith.maximumf %24, %25 : vector<16x128xf32>
    %cst_23 = arith.constant 0.000000e+00 : f32
    %27 = vector.broadcast %cst_23 : f32 to vector<1x128xf32>
    %c0_24 = arith.constant 0 : index
    %c0_25 = arith.constant 0 : index
    %28 = vector.load %arg9[%c0_24, %c0_25] : memref<18x128xf32, #tpu.memory_space<vmem>>, vector<1x128xf32>
    tpu.vector_store %arg9[%c0_24, %c0_25], %27 {strides = array<i32>} : memref<18x128xf32, #tpu.memory_space<vmem>>, vector<1x128xf32>,
    %c17 = arith.constant 17 : index
    %c0_26 = arith.constant 0 : index
    %29 = vector.load %arg9[%c17, %c0_26] : memref<18x128xf32, #tpu.memory_space<vmem>>, vector<1x128xf32>
    tpu.vector_store %arg9[%c17, %c0_26], %27 {strides = array<i32>} : memref<18x128xf32, #tpu.memory_space<vmem>>, vector<1x128xf32>,
    %c1_27 = arith.constant 1 : index
    %c0_28 = arith.constant 0 : index
    %30 = vector.load %arg9[%c1_27, %c0_28] : memref<18x128xf32, #tpu.memory_space<vmem>>, vector<16x128xf32>
    tpu.vector_store %arg9[%c1_27, %c0_28], %26 {strides = array<i32>} : memref<18x128xf32, #tpu.memory_space<vmem>>, vector<16x128xf32>,
    %cst_29 = arith.constant 0.000000e+00 : f32
    %31 = vector.broadcast %cst_29 : f32 to vector<16x128xf32>
    %c0_30 = arith.constant 0 : index
    %c0_31 = arith.constant 0 : index
    %32 = vector.load %arg9[%c0_30, %c0_31] : memref<18x128xf32, #tpu.memory_space<vmem>>, vector<16x128xf32>
    %c0_32 = arith.constant 0 : index
    %c0_33 = arith.constant 0 : index
    %c0_34 = arith.constant 0 : index
    %33 = vector.load %arg3[%c0_32, %c0_33, %c0_34] : memref<3x128x128xf32, #tpu.memory_space<vmem>>, vector<1x128x128xf32>
    %34 = vector.shape_cast %33 : vector<1x128x128xf32> to vector<128x128xf32>
    %cst_35 = arith.constant dense<0.000000e+00> : vector<16x128xf32>
    %35 = tpu.matmul %32, %34, %cst_35 {dimension_numbers = #tpu.dot_dimension_numbers<[1], [0], [0], [1], [0, 0, 1, 1], [], []>} : vector<16x128xf32>, vector<128x128xf32>, vector<16x128xf32> -> vector<16x128xf32>
    %36 = arith.addf %31, %35 : vector<16x128xf32>
    %c1_36 = arith.constant 1 : index
    %c0_37 = arith.constant 0 : index
    %37 = vector.load %arg9[%c1_36, %c0_37] : memref<18x128xf32, #tpu.memory_space<vmem>>, vector<16x128xf32>
    %c1_38 = arith.constant 1 : index
    %c0_39 = arith.constant 0 : index
    %c0_40 = arith.constant 0 : index
    %38 = vector.load %arg3[%c1_38, %c0_39, %c0_40] : memref<3x128x128xf32, #tpu.memory_space<vmem>>, vector<1x128x128xf32>
    %39 = vector.shape_cast %38 : vector<1x128x128xf32> to vector<128x128xf32>
    %cst_41 = arith.constant dense<0.000000e+00> : vector<16x128xf32>
    %40 = tpu.matmul %37, %39, %cst_41 {dimension_numbers = #tpu.dot_dimension_numbers<[1], [0], [0], [1], [0, 0, 1, 1], [], []>} : vector<16x128xf32>, vector<128x128xf32>, vector<16x128xf32> -> vector<16x128xf32>
    %41 = arith.addf %36, %40 : vector<16x128xf32>
    %c2_42 = arith.constant 2 : index
    %c0_43 = arith.constant 0 : index
    %42 = vector.load %arg9[%c2_42, %c0_43] : memref<18x128xf32, #tpu.memory_space<vmem>>, vector<16x128xf32>
    %c2_44 = arith.constant 2 : index
    %c0_45 = arith.constant 0 : index
    %c0_46 = arith.constant 0 : index
    %43 = vector.load %arg3[%c2_44, %c0_45, %c0_46] : memref<3x128x128xf32, #tpu.memory_space<vmem>>, vector<1x128x128xf32>
    %44 = vector.shape_cast %43 : vector<1x128x128xf32> to vector<128x128xf32>
    %cst_47 = arith.constant dense<0.000000e+00> : vector<16x128xf32>
    %45 = tpu.matmul %42, %44, %cst_47 {dimension_numbers = #tpu.dot_dimension_numbers<[1], [0], [0], [1], [0, 0, 1, 1], [], []>} : vector<16x128xf32>, vector<128x128xf32>, vector<16x128xf32> -> vector<16x128xf32>
    %46 = arith.addf %41, %45 : vector<16x128xf32>
    %c0_48 = arith.constant 0 : index
    %c0_49 = arith.constant 0 : index
    %47 = vector.load %arg6[%c0_48, %c0_49] : memref<1x128xf32, #tpu.memory_space<vmem>>, vector<1x128xf32>
    %48 = vector.broadcast %47 : vector<1x128xf32> to vector<16x128xf32>
    %49 = arith.mulf %46, %48 : vector<16x128xf32>
    %c0_50 = arith.constant 0 : index
    %c0_51 = arith.constant 0 : index
    %50 = vector.load %arg7[%c0_50, %c0_51] : memref<1x128xf32, #tpu.memory_space<vmem>>, vector<1x128xf32>
    %51 = vector.broadcast %50 : vector<1x128xf32> to vector<16x128xf32>
    %52 = arith.addf %49, %51 : vector<16x128xf32>
    %cst_52 = arith.constant 0.000000e+00 : f32
    %53 = vector.broadcast %cst_52 : f32 to vector<16x128xf32>
    %54 = arith.maximumf %52, %53 : vector<16x128xf32>
    %c0_53 = arith.constant 0 : index
    %c0_54 = arith.constant 0 : index
    %c0_55 = arith.constant 0 : index
    %55 = vector.load %arg8[%c0_53, %c0_54, %c0_55] : memref<1x16x128xf32, #tpu.memory_space<vmem>>, vector<1x16x128xf32>
    %56 = vector.shape_cast %55 : vector<1x16x128xf32> to vector<16x128xf32>
    %57 = vector.shape_cast %54 : vector<16x128xf32> to vector<1x16x128xf32>
    tpu.vector_store %arg8[%c0_53, %c0_54, %c0_55], %57 {strides = array<i32>} : memref<1x16x128xf32, #tpu.memory_space<vmem>>, vector<1x16x128xf32>,
    return
  }
  func.func @transform_0(%arg0: i32) -> (i32, i32, i32) {
    %c0_i32 = arith.constant 0 : i32
    %c0_i32_0 = arith.constant 0 : i32
    %c0_i32_1 = arith.constant 0 : i32
    return %arg0, %c0_i32, %c0_i32_0 : i32, i32, i32
  }
  func.func @transform_1(%arg0: i32) -> (i32, i32, i32) {
    %c0_i32 = arith.constant 0 : i32
    %c0_i32_0 = arith.constant 0 : i32
    %c0_i32_1 = arith.constant 0 : i32
    %c0_i32_2 = arith.constant 0 : i32
    return %c0_i32, %c0_i32_0, %c0_i32_1 : i32, i32, i32
  }
  func.func @transform_2(%arg0: i32) -> (i32, i32, i32) {
    %c0_i32 = arith.constant 0 : i32
    %c0_i32_0 = arith.constant 0 : i32
    %c0_i32_1 = arith.constant 0 : i32
    %c0_i32_2 = arith.constant 0 : i32
    return %c0_i32, %c0_i32_0, %c0_i32_1 : i32, i32, i32
  }
  func.func @transform_3(%arg0: i32) -> (i32, i32) {
    %c0_i32 = arith.constant 0 : i32
    %c0_i32_0 = arith.constant 0 : i32
    %c0_i32_1 = arith.constant 0 : i32
    return %c0_i32, %c0_i32_0 : i32, i32
  }
  func.func @transform_4(%arg0: i32) -> (i32, i32) {
    %c0_i32 = arith.constant 0 : i32
    %c0_i32_0 = arith.constant 0 : i32
    %c0_i32_1 = arith.constant 0 : i32
    return %c0_i32, %c0_i32_0 : i32, i32
  }
  func.func @transform_5(%arg0: i32) -> (i32, i32) {
    %c0_i32 = arith.constant 0 : i32
    %c0_i32_0 = arith.constant 0 : i32
    %c0_i32_1 = arith.constant 0 : i32
    return %c0_i32, %c0_i32_0 : i32, i32
  }
  func.func @transform_6(%arg0: i32) -> (i32, i32) {
    %c0_i32 = arith.constant 0 : i32
    %c0_i32_0 = arith.constant 0 : i32
    %c0_i32_1 = arith.constant 0 : i32
    return %c0_i32, %c0_i32_0 : i32, i32
  }
  func.func @transform_7(%arg0: i32) -> (i32, i32, i32) {
    %c0_i32 = arith.constant 0 : i32
    %c0_i32_0 = arith.constant 0 : i32
    %c0_i32_1 = arith.constant 0 : i32
    return %arg0, %c0_i32, %c0_i32_0 : i32, i32, i32
  }
}

</mosaic_0001>

<bundles_post_ra>
// kernel: tpu_custom_call.1
= control target key start
LH: loop header
LB: loop body
LE: loop exit
PB: predicated region body
PF: predicated region fallthrough
CT: control target
= control target key end

     0   :  { %12 = vsyncpa [#allocation4], 0  ;;  %s1101_s0 = inlined_call_operand.vmem [shape: f32[2,18,64], index: 0, kind: input, shape index: {}]   ;;  %s1102_s1 = inlined_call_operand.hbm [shape: f32[3,64,128], index: 1, kind: input, shape index: {}]   ;;  %s1103_s2 = inlined_call_operand.hbm [shape: f32[3,128,128], index: 2, kind: input, shape index: {}]   ;;  %s1104_s3 = inlined_call_operand.vmem [shape: f32[1,128], index: 3, kind: input, shape index: {}]   ;;  %s1105_s4 = inlined_call_operand.vmem [shape: f32[1,128], index: 4, kind: input, shape index: {}]   ;;  %s1106_s5 = inlined_call_operand.vmem [shape: f32[1,128], index: 5, kind: input, shape index: {}]   ;;  %s1107_s6 = inlined_call_operand.vmem [shape: f32[1,128], index: 6, kind: input, shape index: {}]   ;;  %s1108_s7 = inlined_call_operand.hbm [shape: f32[2,16,128], index: 7, kind: output, shape index: {}]  }
   0x1   :  { %13 = vsyncpa [#allocation7], 0 }
   0x2   :  { %14 = vsyncpa [#allocation5], 0 }
   0x3   :  { %16 = vsyncpa [#allocation5 + $0x1], 0  ;;  %s965_s24 = smov 0   ;;  %s967_s25 = smov 0  }
   0x4   :  { %s969_s26 = smov 0   ;;  %s971_s27 = smov 0  }
   0x5 LB: > { %s986_s28 = sadd.s32 4294967295, %s916_s27   ;;  %s694_s29 = sadd.s32 4294967294, %s916_s27   ;;  %s916_s27 = sphi %s971_s27, %s1115_s27   ;;  %s912_s26 = sphi %s969_s26, %s1114_s26   ;;  %s908_s25 = sphi %s967_s25, %s1113_s25   ;;  %s904_s24 = sphi %s965_s24, %s1112_s24  }
   0x6   : > { %s990_s30 = sadd.s32 1, %s916_s27   ;;  %s181_s8 = sadd.s32 1, %s912_s26 }
   0x7   : > { %s178_s9 = ssub.s32 %s916_s27, %s990_s30  ;;  %p191_p0 = scmp.ne.s32.totalorder %s912_s26, %s908_s25 }
   0x8   : > { %p179_p1 = scmp.eq.s32.totalorder %s178_s9, 0  ;;  %p192_p2 = scmp.eq.s32.totalorder %s986_s28, 1 }
   0x9   : > { %p197_p3 = scmp.ne.s32.totalorder %s908_s25, %s904_s24  ;;  %p198_p4 = scmp.eq.s32.totalorder %s694_s29, 1 }
   0xa   : > { %s1001_s10 = scalar_select %p179_p1, %s912_s26, %s181_s8  }
   0xb   : > { %p1003_p5 = por %p192_p2, %p191_p0  ;;  %p1007_p6 = por %p198_p4, %p197_p3 }
   0xc   : > { %p695_p7 = scmp.ge.s32.totalorder %s916_s27, 1  ;;  %p205_p8 = scmp.lt.s32.totalorder %s916_s27, 3 }
   0xd   : > { %p738_p9 = scmp.eq.s32.totalorder %s986_s28, 0  ;;  %s216_s16 = sshll.u32 %s1102_s1, 4  ;;  %s217_s16 = int_to_ptr.hbm [resolvable:$true] %s216_s16 }
   0xe   : > { %p1014_p10 = pnand %p695_p7, %p205_p8  ;;  %s918_s17 = smov [#allocation3]  }
   0xf   : > { %s218_s18 = sshll.u32 %s918_s17, 4  ;;  %s230_s21 = sshll.u32 %s1103_s2, 4  ;;  %s219_s18 = int_to_ptr.vmem [resolvable:$true] %s218_s18  ;;  %s231_s21 = int_to_ptr.hbm [resolvable:$true] %s230_s21 }
  0x10   : > { %p727_p11 = pneg %p1014_p10  ;;  %s919_s22 = smov 128  }
  0x11   : > { %s920_s23 = smov 8   ;;  %s921_s29 = smov [#allocation6]  }
  0x12   : > { %p728_p12 = pnand %p738_p9, %p727_p11  ;;  %s232_s8 = sshll.u32 %s921_s29, 4  ;;  %s233_s8 = int_to_ptr.vmem [resolvable:$true] %s232_s8 }
  0x13   : > { %268 = sbr.rel (%p1014_p10) target bundleno = 362 (0x16a), region = 48 }
  0x14   : > { %730 = dma.hbm_to_vmem [thread:$0]  (!%p728_p12), %s217_s16, 3072, %s219_s18, [#allocation4], %s919_s22, %s919_s22, %s920_s23  }
  0x15   : > { %733 = dma.hbm_to_vmem [thread:$0]  (!%p728_p12), %s231_s21, 6144, %s233_s8, [#allocation7], %s919_s22, %s919_s22, %s920_s23  }
  0x18   : > { %891 = dma.done.wait (%p738_p9), [#allocation4], 3072  }
  0x19   : > { %893 = vsyncadd (%p738_p9), [#allocation4], 4294964224 }
  0x1a   : > { %895 = dma.done.wait (%p738_p9), [#allocation7], 6144  }
  0x1b   : > { %897 = vsyncadd (%p738_p9), [#allocation7], 4294961152  ;;  %p306_p13 = scmp.lt.s32.totalorder %s986_s28, 1  ;;  %v331_v0 = vld [vmem:[#allocation3 + $0x78] sm:$0xff]  ;;  %v330_v1 = vld [vmem:[#allocation3 + $0x70] sm:$0xff]  ;;  %vm332_vm0 = vcmask 523264  }
  0x1c   : > { %347 = vmatpush.msra.mxu2 %v331_v0  ;;  %v320_v2 = vld [vmem:[#allocation3 + $0x38] sm:$0xff]  ;;  %v329_v3 = vld [vmem:[#allocation3 + $0x68] sm:$0xff]  ;;  %v319_v4 = vld [vmem:[#allocation3 + $0x30] sm:$0xff]  ;;  %s303_s23 = sand.u32 1, %s908_s25   ;;  %s866_s8 = scalar_lea.hbm %s1108_s7, 32 }
  0x1d   : > { %376 = vmatpush.msra.mxu1 %v320_v2  ;;  %s307_s9 = scalar_select %p306_p13, %s986_s28, 1  ;;  %v318_v5 = vld [vmem:[#allocation3 + $0x28] sm:$0xff]  ;;  %v328_v6 = vld [vmem:[#allocation3 + $0x60] sm:$0xff]  ;;  %v327_v8 = vld [vmem:[#allocation3 + $0x58] sm:$0xff] }
  0x1e   : > { %348 = vmatpush.msra.mxu2 %v330_v1  ;;  %v317_v7 = vld [vmem:[#allocation3 + $0x20] sm:$0xff]  ;;  %v316_v9 = vld [vmem:[#allocation3 + $0x18] sm:$0xff]  ;;  %v326_v10 = vld [vmem:[#allocation3 + $0x50] sm:$0xff] }
  0x1f   : > { %377 = vmatpush.msra.mxu1 %v319_v4  ;;  %s716_s13 = smul.u32 24, %s307_s9  ;;  %v325_v11 = vld [vmem:[#allocation3 + $0x48] sm:$0xff]  ;;  %v315_v12 = vld [vmem:[#allocation3 + $0x10] sm:$0xff]  ;;  %v324_v14 = vld [vmem:[#allocation3 + $0x40] sm:$0xff]  ;;  %v922_v4 = vmov 0.0   ;;  %s702_s9 = sshll.u32 %s303_s23, 4 }
  0x20   : > { %349 = vmatpush.msra.mxu2 %v329_v3  ;;  %v314_v13 = vld [vmem:[#allocation3 + $0x8] sm:$0xff]  ;;  %v313_v16 = vld [vmem:[#allocation3] sm:$0xff]  ;;  %v401_v17 = vld [vmem:[#allocation3 + $0xb8] sm:$0xff]  ;;  %447 = vst [vmem:[#allocation2] sm:$0x1] %v922_v4  ;;  %s305_s17 = scalar_lea.vmem [#allocation8], %s702_s9 }
  0x21   : > { %378 = vmatpush.msra.mxu1 %v318_v5  ;;  %s1043_s16 = scalar_lea.vmem %s1101_s0, %s716_s13  ;;  %v400_v19 = vld [vmem:[#allocation3 + $0xb0] sm:$0xff]  ;;  %v399_v20 = vld [vmem:[#allocation3 + $0xa8] sm:$0xff]  ;;  %v398_v21 = vld [vmem:[#allocation3 + $0xa0] sm:$0xff]  ;;  %448 = vst [vmem:[#allocation2 + $0x11] sm:$0x1] %v922_v4  ;;  %s715_s13 = sshll.u32 %s986_s28, 4 }
  0x22   : > { %350 = vmatpush.msra.mxu2 %v328_v6  ;;  %v321_v15 = vld [vmem:[%s1043_s16 + $0x1] sm:$0xff]  ;;  %v322_v22 = vld [vmem:[%s1043_s16 + $0x9] sm:$0xff]  ;;  %v394_v27 = vld [vmem:[#allocation3 + $0x80] sm:$0xff]  ;;  %s607_s18 = sshll.u32 %s305_s17, 4  ;;  %s595_s28 = scalar_lea.sflag [#allocation5], %s303_s23  ;;  %s608_s18 = int_to_ptr.vmem [resolvable:$true] %s607_s18 }
  0x23   : > { %379 = vmatpush.msra.mxu1 %v317_v7  ;;  %v311_v18 = vld [vmem:[%s1043_s16] sm:$0xff]  ;;  %v397_v23 = vld [vmem:[#allocation3 + $0x98] sm:$0xff]  ;;  %v312_v24 = vld [vmem:[%s1043_s16 + $0x8] sm:$0xff] }
  0x24   : > { %351 = vmatpush.msra.mxu2 %v327_v8  ;;  %v396_v25 = vld [vmem:[#allocation3 + $0x90] sm:$0xff]  ;;  %v395_v26 = vld [vmem:[#allocation3 + $0x88] sm:$0xff]  ;;  %v487_v30 = vld [vmem:[#allocation6 + $0xf8] sm:$0xff] }
  0x25   : > { %380 = vmatpush.msra.mxu1 %v316_v9  ;;  %v391_v28 = vld [vmem:[%s1043_s16 + $0x2] sm:$0xff]  ;;  %v392_v29 = vld [vmem:[%s1043_s16 + $0xa] sm:$0xff]  ;;  %488 = vmatpush.msra.mxu3 %v487_v30  ;;  %v484_v33 = vld [vmem:[#allocation6 + $0xe0] sm:$0xff]  ;;  %s606_s16 = scalar_lea.hbm %s1108_s7, %s715_s13 }
  0x26   : > { %352 = vmatpush.msra.mxu2 %v326_v10  ;;  %v486_v31 = vld [vmem:[#allocation6 + $0xf0] sm:$0xff]  ;;  %v485_v32 = vld [vmem:[#allocation6 + $0xe8] sm:$0xff]  ;;  %v468_v34 = vld [vmem:[#allocation6 + $0x78] sm:$0xff]  ;;  %s609_s19 = sshll.u32 %s606_s16, 4  ;;  %s610_s19 = int_to_ptr.hbm [resolvable:$true] %s609_s19 }
  0x27   : > { %381 = vmatpush.msra.mxu1 %v315_v12  ;;  %489 = vmatpush.msra.mxu3 %v486_v31  ;;  %v467_v35 = vld [vmem:[#allocation6 + $0x70] sm:$0xff]  ;;  %v483_v36 = vld [vmem:[#allocation6 + $0xd8] sm:$0xff]  ;;  %v466_v37 = vld [vmem:[#allocation6 + $0x68] sm:$0xff]  ;;  %s860_s20 = sshra.s32 %s610_s19, 4  ;;  %s861_s20 = int_to_ptr.hbm [resolvable:$true] %s860_s20 }
  0x28   : > { %353 = vmatpush.msra.mxu2 %v325_v11  ;;  %511 = vmatpush.msra.mxu0 %v468_v34  ;;  %v482_v38 = vld [vmem:[#allocation6 + $0xd0] sm:$0xff]  ;;  %v481_v39 = vld [vmem:[#allocation6 + $0xc8] sm:$0xff]  ;;  %v465_v40 = vld [vmem:[#allocation6 + $0x60] sm:$0xff]  ;;  %s862_s21 = scalar_lea.hbm %s861_s20, 16  ;;  %p867_p3 = scmp.lt.s32.totalorder %s861_s20, %s1108_s7 }
  0x29   : > { %382 = vmatpush.msra.mxu1 %v314_v13  ;;  %490 = vmatpush.msra.mxu3 %v485_v32  ;;  %v480_v41 = vld [vmem:[#allocation6 + $0xc0] sm:$0xff]  ;;  %v464_v42 = vld [vmem:[#allocation6 + $0x58] sm:$0xff]  ;;  %v463_v44 = vld [vmem:[#allocation6 + $0x50] sm:$0xff]  ;;  %p863_p0 = scmp.ne.s32.totalorder %s861_s20, %s862_s21  ;;  %p868_p4 = scmp.lt.s32.totalorder %s866_s8, %s862_s21 }
  0x2a   : > { %354 = vmatpush.msra.mxu2 %v324_v14  ;;  %512 = vmatpush.msra.mxu0 %v467_v35  ;;  %v552_v43 = vld [vmem:[#allocation6 + $0x178] sm:$0xff]  ;;  %v551_v45 = vld [vmem:[#allocation6 + $0x170] sm:$0xff]  ;;  %v462_v46 = vld [vmem:[#allocation6 + $0x48] sm:$0xff] }
  0x2b   : > { %704 = vmatmul.msk.f32.vlgmr.msra.gmra.mxu2 %vm332_vm0, %v321_v15  ;;  %383 = vmatpush.msra.mxu1 %v313_v16  ;;  %v550_v47 = vld [vmem:[#allocation6 + $0x168] sm:$0xff]  ;;  %v479_v48 = vld [vmem:[#allocation6 + $0xb8] sm:$0xff]  ;;  %v478_v49 = vld [vmem:[#allocation6 + $0xb0] sm:$0xff]  ;;  %p864_p1 = pnand %p863_p0, %p1003_p5  ;;  %p869_p7 = por %p868_p4, %p867_p3 }
  0x2c   : > { %416 = vmatpush.msrb.mxu2 %v401_v17  ;;  %706 = vmatmul.msk.f32.vlgmr.msra.gmra.mxu1 %vm332_vm0, %v311_v18  ;;  %v477_v50 = vld [vmem:[#allocation6 + $0xa8] sm:$0xff]  ;;  %v461_v51 = vld [vmem:[#allocation6 + $0x40] sm:$0xff]  ;;  %v460_v54 = vld [vmem:[#allocation6 + $0x38] sm:$0xff] }
  0x2d   : > { %491 = vmatpush.msra.mxu3 %v484_v33  ;;  %513 = vmatpush.msra.mxu0 %v466_v37  ;;  %v549_v52 = vld [vmem:[#allocation6 + $0x160] sm:$0xff]  ;;  %v548_v55 = vld [vmem:[#allocation6 + $0x158] sm:$0xff]  ;;  %v459_v57 = vld [vmem:[#allocation6 + $0x30] sm:$0xff]  ;;  %p865_p2 = pneg %p864_p1 }
  0x2e   : > { %417 = vmatpush.msrb.mxu2 %v400_v19  ;;  %553 = vmatpush.msrb.mxu1 %v552_v43  ;;  %v476_v53 = vld [vmem:[#allocation6 + $0xa0] sm:$0xff]  ;;  %v475_v56 = vld [vmem:[#allocation6 + $0x98] sm:$0xff]  ;;  %v547_v58 = vld [vmem:[#allocation6 + $0x150] sm:$0xff] }
  0x2f   : > { %492 = vmatpush.msra.mxu3 %v483_v36  ;;  %514 = vmatpush.msra.mxu0 %v465_v40  ;;  %v474_v59 = vld [vmem:[#allocation6 + $0x90] sm:$0xff]  ;;  %v458_v60 = vld [vmem:[#allocation6 + $0x28] sm:$0xff]  ;;  %v457_v63 = vld [vmem:[#allocation6 + $0x20] sm:$0xff]  ;;  %p870_p8 = pnand %p869_p7, %p865_p2 }
  0x30   : > { %418 = vmatpush.msrb.mxu2 %v399_v20  ;;  %554 = vmatpush.msrb.mxu1 %v551_v45  ;;  %v546_v61 = vld [vmem:[#allocation6 + $0x148] sm:$0xff]  ;;  %v545_v0 = vld [vmem:[#allocation6 + $0x140] sm:$0xff]  ;;  %v456_v2 = vld [vmem:[#allocation6 + $0x18] sm:$0xff] }
  0x31   : > { %493 = vmatpush.msra.mxu3 %v482_v38  ;;  %515 = vmatpush.msra.mxu0 %v464_v42  ;;  %v473_v62 = vld [vmem:[#allocation6 + $0x88] sm:$0xff]  ;;  %v472_v1 = vld [vmem:[#allocation6 + $0x80] sm:$0xff]  ;;  %v544_v3 = vld [vmem:[#allocation6 + $0x138] sm:$0xff] }
  0x32   : > { %419 = vmatpush.msrb.mxu2 %v398_v21  ;;  %555 = vmatpush.msrb.mxu1 %v550_v47  ;;  %v455_v5 = vld [vmem:[#allocation6 + $0x10] sm:$0xff]  ;;  %v454_v7 = vld [vmem:[#allocation6 + $0x8] sm:$0xff]  ;;  %v453_v9 = vld [vmem:[#allocation6] sm:$0xff] }
  0x33   : > { %705 = vmatmul.msk.f32.gmra.mxu2 %vm332_vm0, %v322_v22  ;;  %494 = vmatpush.msra.mxu3 %v481_v39  ;;  %v543_v6 = vld [vmem:[#allocation6 + $0x130] sm:$0xff]  ;;  %v542_v8 = vld [vmem:[#allocation6 + $0x128] sm:$0xff]  ;;  %v541_v10 = vld [vmem:[#allocation6 + $0x120] sm:$0xff] }
  0x34   : > { %420 = vmatpush.msrb.mxu2 %v397_v23  ;;  %707 = vmatmul.msk.f32.gmra.mxu1 %vm332_vm0, %v312_v24  ;;  %v540_v12 = vld [vmem:[#allocation6 + $0x118] sm:$0xff]  ;;  %v539_v13 = vld [vmem:[#allocation6 + $0x110] sm:$0xff]  ;;  %v538_v14 = vld [vmem:[#allocation6 + $0x108] sm:$0xff] }
  0x35   : > { %495 = vmatpush.msra.mxu3 %v480_v41  ;;  %516 = vmatpush.msra.mxu0 %v463_v44  ;;  %v537_v15 = vld [vmem:[#allocation6 + $0x100] sm:$0xff]  ;;  %v782_v19 = vld [vmem:[%s1104_s3] ss:$0 sm:$0xff] }
  0x36   : > { %421 = vmatpush.msrb.mxu2 %v396_v25  ;;  %556 = vmatpush.msrb.mxu1 %v549_v52  ;;  %v783_v22 = vld [vmem:[%s1105_s4] ss:$0 sm:$0xff] }
  0x37   : > { %496 = vmatpush.msra.mxu3 %v479_v48  ;;  %517 = vmatpush.msra.mxu0 %v462_v46  ;;  %v784_v40 = vld [vmem:[%s1106_s5] ss:$0 sm:$0xff] }
  0x38   : > { %422 = vmatpush.msrb.mxu2 %v395_v26  ;;  %557 = vmatpush.msrb.mxu1 %v548_v55  ;;  %v785_v43 = vld [vmem:[%s1107_s6] ss:$0 sm:$0xff] }
  0x39   : > { %497 = vmatpush.msra.mxu3 %v478_v49  ;;  %518 = vmatpush.msra.mxu0 %v461_v51 }
  0x3a   : > { %423 = vmatpush.msrb.mxu2 %v394_v27  ;;  %558 = vmatpush.msrb.mxu1 %v547_v58 }
  0x3b   : > { %708 = vmatmul.msk.f32.vlgmr.msrb.gmra.mxu2 %vm332_vm0, %v391_v28  ;;  %498 = vmatpush.msra.mxu3 %v477_v50 }
  0x3c   : > { %519 = vmatpush.msra.mxu0 %v460_v54  ;;  %559 = vmatpush.msrb.mxu1 %v546_v61 }
  0x3d   : > { %499 = vmatpush.msra.mxu3 %v476_v53 }
  0x3e   : > { %520 = vmatpush.msra.mxu0 %v459_v57  ;;  %560 = vmatpush.msrb.mxu1 %v545_v0 }
  0x3f   : > { %500 = vmatpush.msra.mxu3 %v475_v56 }
  0x40   : > { %521 = vmatpush.msra.mxu0 %v458_v60  ;;  %561 = vmatpush.msrb.mxu1 %v544_v3 }
  0x41   : > { %501 = vmatpush.msra.mxu3 %v474_v59 }
  0x42   : > { %522 = vmatpush.msra.mxu0 %v457_v63  ;;  %562 = vmatpush.msrb.mxu1 %v543_v6 }
  0x43   : > { %709 = vmatmul.msk.f32.gmra.mxu2 %vm332_vm0, %v392_v29  ;;  %502 = vmatpush.msra.mxu3 %v473_v62 }
  0x44   : > { %523 = vmatpush.msra.mxu0 %v456_v2  ;;  %563 = vmatpush.msrb.mxu1 %v542_v8 }
  0x45   : > { %503 = vmatpush.msra.mxu3 %v472_v1 }
  0x46   : > { %524 = vmatpush.msra.mxu0 %v455_v5  ;;  %564 = vmatpush.msrb.mxu1 %v541_v10 }
  0x48   : > { %525 = vmatpush.msra.mxu0 %v454_v7  ;;  %565 = vmatpush.msrb.mxu1 %v540_v12 }
  0x4a   : > { %526 = vmatpush.msra.mxu0 %v453_v9  ;;  %566 = vmatpush.msrb.mxu1 %v539_v13 }
  0x4c   : > { %567 = vmatpush.msrb.mxu1 %v538_v14 }
  0x4e   : > { %568 = vmatpush.msrb.mxu1 %v537_v15 }
  0xa9   : > { %v385_v17 = vpop.f32.mrf.mxu1 }
  0xae   : > { %v356_v11 = vpop.f32.mrf.mxu2 }
  0xaf   : > { %v386_v18 = vadd.f32 %v385_v17, %v356_v11 }
  0xb1   : > { %v388_v24 = vpop.f32.mrf.mxu1 }
  0xb6   : > { %v359_v16 = vpop.f32.mrf.mxu2 }
  0xb7   : > { %v389_v26 = vadd.f32 %v388_v24, %v359_v16 }
  0xbe   : > { %v425_v20 = vpop.f32.mrf.mxu2 }
  0xbf   : > { %v431_v21 = vadd.f32 %v425_v20, %v386_v18 }
  0xc1   : > { %v437_v23 = vmul.f32 %v782_v19, %v431_v21 }
  0xc3   : > { %v443_v25 = vadd.f32 %v783_v22, %v437_v23 }
  0xc5   : > { %v445_v27 = vmax.f32 %v443_v25, 0.0 }
  0xc6   : > { %v428_v28 = vpop.f32.mrf.mxu2 }
  0xc7   : > { %449 = vst [vmem:[#allocation2 + $0x1] sm:$0xff] %v445_v27  ;;  %v432_v29 = vadd.f32 %v428_v28, %v389_v26  ;;  %504 = vmatmul.f32.vlgmr.msra.gmra.mxu3 %v445_v27 }
  0xc9   : > { %v438_v30 = vmul.f32 %v782_v19, %v432_v29 }
  0xcb   : > { %v444_v31 = vadd.f32 %v783_v22, %v438_v30 }
  0xcd   : > { %v446_v32 = vmax.f32 %v444_v31, 0.0 }
  0xce   : > { %v451_v33 = vld [vmem:[#allocation2] sm:$0xff] }
  0xcf   : > { %450 = vst [vmem:[#allocation2 + $0x9] sm:$0xff] %v446_v32  ;;  %527 = vmatmul.f32.vlgmr.msra.gmra.mxu0 %v451_v33  ;;  %507 = vmatmul.f32.gmra.mxu3 %v446_v32 }
  0xd6   : > { %v452_v34 = vld [vmem:[#allocation2 + $0x8] sm:$0xff] }
  0xd7   : > { %v534_v35 = vld [vmem:[#allocation2 + $0x2] sm:$0xff]  ;;  %530 = vmatmul.f32.gmra.mxu0 %v452_v34  ;;  %v535_v36 = vld [vmem:[#allocation2 + $0xa] sm:$0xff] }
  0xd8   : > { %569 = vmatmul.f32.vlgmr.msrb.gmra.mxu1 %v534_v35 }
  0xe0   : > { %572 = vmatmul.f32.gmra.mxu1 %v535_v36 }
 0x14a   : > { %v505_v38 = vpop.f32.mrf.mxu3 }
 0x14c   : > { %v528_v37 = vpop.f32.mrf.mxu0 }
 0x14d   : > { %v529_v39 = vadd.f32 %v528_v37, %v505_v38 }
 0x152   : > { %v508_v47 = vpop.f32.mrf.mxu3 }
 0x154   : > { %v531_v45 = vpop.f32.mrf.mxu0 }
 0x155   : > { %v570_v41 = vpop.f32.mrf.mxu1  ;;  %v532_v49 = vadd.f32 %v531_v45, %v508_v47 }
 0x156   : > { %v576_v42 = vadd.f32 %v570_v41, %v529_v39 }
 0x158   : > { %v582_v44 = vmul.f32 %v784_v40, %v576_v42 }
 0x15a   : > { %v588_v46 = vadd.f32 %v785_v43, %v582_v44 }
 0x15c   : > { %v590_v48 = vmax.f32 %v588_v46, 0.0 }
 0x15d   : > { %v573_v50 = vpop.f32.mrf.mxu1 }
 0x15e   : > { %592 = vst [vmem:[%s305_s17] sm:$0xff] %v590_v48  ;;  %v577_v51 = vadd.f32 %v573_v50, %v532_v49 }
 0x160   : > { %v583_v52 = vmul.f32 %v784_v40, %v577_v51 }
 0x162   : > { %v589_v53 = vadd.f32 %v785_v43, %v583_v52 }
 0x164   : > { %v591_v54 = vmax.f32 %v589_v53, 0.0 }
 0x166   : > { %593 = vst [vmem:[%s305_s17 + $0x8] sm:$0xff] %v591_v54 }
 0x167   : > { %873 = shalt.err (!%p870_p8)
}
 0x168   : > { %s923_s23 = smov 128   ;;  %s924_s14 = smov 8  }
 0x169   : > { %725 = dma.vmem_to_hbm [thread:$0]  (%p1003_p5), %s608_s18, 256, %s610_s19, %s595_s28, %s923_s23, %s923_s23, %s924_s14  }
 0x16a PF: > { %p742_p9 = scmp.ge.s32.totalorder %s916_s27, 2  ;;  %s624_s15 = sand.u32 1, %s904_s24  }
 0x16b   : > { %s625_s16 = scalar_lea.sflag [#allocation5], %s624_s15 }
 0x16c   : > { %p735_p10 = pnand %p742_p9, %p1007_p6 }
 0x16e   : > { %p736_p11 = pneg %p735_p10 }
 0x170   : > { %899 = dma.done.wait (%p736_p11), %s625_s16, 256  }
 0x171   : > { %901 = vsyncadd (%p736_p11), %s625_s16, 4294967040  ;;  %p19_p12 = scmp.ge.s32.totalorder %s990_s30, 4   ;;  %s1112_s24 = smov %s908_s25 }
 0x172   : > { %s1113_s25 = smov %s912_s26  ;;  %s1114_s26 = smov %s1001_s10 }
 0x173   : > { %s1115_s27 = smov %s990_s30  ;;  %21 = sbr.rel (!%p19_p12) target bundleno = 5 (0x5), region = 96 }
 0x178   :  { %631 = vsyncpa [#allocation4], 1 }
 0x179   :  { %633 = vsyncpa [#allocation4 + $0x1], 1 }
 0x17a   :  { %634 = vsyncpa [#allocation7], 1 }
 0x17b   :  { %635 = vsyncpa [#allocation5], 1 }
 0x17c   :  { %637 = vsyncpa [#allocation5 + $0x1], 1 }

</bundles_post_ra>
